<compile_context>
chip_gen: v6e
topology: v6e:2x2x1
jax: 0.10.0
libtpu: 0.0.40
codegen_flags: <defaults>
</compile_context>

<pallas_src>
import functools

import jax
import jax.numpy as jnp
from jax import lax
from jax.experimental import pallas as pl
from jax.experimental.pallas import tpu as pltpu


def _encoding_kernel(x_ref, cs_ref, s_ref, sc2_ref, et_ref, aa_ref,
                     acc_et, acc_a, *, n_total, needs_mask, mm_dtype):
    # x_ref  : (1, D, tn)  channels-first feature slice (lane axis = spatial)
    # cs_ref : (K, D)      -2 * scale_k * codewords (matmul-1 LHS)
    # s_ref  : (K, 1) f32  smoothing factors
    # sc2_ref: (K, 1) f32  scale_k * ||d_k||^2 (grid-invariant)
    # et_ref : (1, D, K)   output: sum_i a[i,k] * x[i,d]  (transposed, f32)
    # aa_ref : (1, K, 1)   output: sum_i a[i,k]           (f32)
    # acc_et : (D, K) f32  accumulator (transposed so the MXU streams x as LHS)
    # acc_a  : (K, 1) f32  accumulator
    n = pl.program_id(1)
    n_last = pl.num_programs(1) - 1

    @pl.when(n == 0)
    def _init():
        acc_et[...] = jnp.zeros_like(acc_et)
        acc_a[...] = jnp.zeros_like(acc_a)

    x = x_ref[0]                                  # (D, tn), native dtype
    tn = x.shape[-1]

    if needs_mask:
        col = lax.broadcasted_iota(jnp.int32, (1, tn), 1)
        valid = (n * tn + col) < n_total          # (1, tn); all-true except last tile
        # Only the last tile can contain OOB (possibly Inf/NaN) padding, so
        # only pay the (D, tn) select there.
        x = lax.cond(n == n_last,
                     lambda v: jnp.where(valid, v, jnp.zeros_like(v)),
                     lambda v: v,
                     x)

    x_mm = x if x.dtype == mm_dtype else x.astype(mm_dtype)

    s = s_ref[...]                                # (K, 1) f32
    sc2 = sc2_ref[...]                            # (K, 1) f32

    # ||x_i||^2 per column.  (For bf16 inputs this is the one f32 (D, tn)
    # temporary; kept in f32 for accuracy across all generations.)
    xf = x.astype(jnp.float32)
    x2 = jnp.sum(xf * xf, axis=0, keepdims=True)  # (1, tn)

    # MXU matmul 1: (K, D) x (D, tn) -> (K, tn); -2*scale already folded in.
    cx = lax.dot_general(cs_ref[...], x_mm, (((1,), (0,)), ((), ())),
                         preferred_element_type=jnp.float32)
    sl = s * x2 + cx + sc2                        # scaled L2 distances, (K, tn)

    # Softmax over the codeword axis (sublanes).
    m = jnp.max(sl, axis=0, keepdims=True)
    ex = jnp.exp(sl - m)
    denom = jnp.sum(ex, axis=0, keepdims=True)
    inv = pl.reciprocal(denom, approx=True)       # EUP seed (own VLIW slot)
    inv = inv * (2.0 - denom * inv)               # one Newton step -> ~f32-exact
    a = ex * inv                                  # (K, tn) f32

    if needs_mask:
        a = jnp.where(valid, a, jnp.zeros_like(a))  # cheap (K, tn) mask

    # MXU matmul 2 (flipped orientation): (D, tn) x (K, tn)^T -> (D, K).
    # The stationary weight tile (tn x K) is reused over D streamed rows,
    # instead of being reloaded for only K (<256) rows.
    a_mx = a.astype(mm_dtype)
    acc_et[...] += lax.dot_general(x_mm, a_mx, (((1,), (1,)), ((), ())),
                                   preferred_element_type=jnp.float32)
    acc_a[...] += jnp.sum(a, axis=1, keepdims=True)

    @pl.when(n == n_last)
    def _finalize():
        et_ref[0] = acc_et[...]
        aa_ref[0] = acc_a[...]


def _vmem_capacity_bytes():
    """Per-core VMEM capacity; conservative 64 MiB (v7x) fallback."""
    try:
        cap = int(pltpu.get_tpu_info().vmem_capacity_bytes)
        if cap >= 32 * 1024 * 1024:
            return cap
    except Exception:
        pass
    return 64 * 1024 * 1024


def _derive_tile_and_vmem(n, d, k, x_bytes, max_tile_n):
    """Pick the spatial tile (lane axis) and the VMEM budget.

    Footprint per step ~= 2*D*tn*x_bytes (double-buffered x)
                        + 4*D*tn          (f32 x^2 temp)
                        + ~6*4*K*tn       (sl/ex/a temps)
                        + small constants (codewords, accumulators, outputs).
    """
    cap = _vmem_capacity_bytes()
    budget = (2 * cap) // 3                       # headroom for compiler scratch
    per_col = 2 * d * x_bytes + 4 * d + 6 * 4 * k
    fixed = 8 * (d * k + k) * 4 + (2 << 20)
    tn = (budget - fixed) // per_col
    tn = max(128, min(int(tn), 8192))
    tn = (tn // 128) * 128                        # lane-aligned
    if max_tile_n is not None:
        tn = min(tn, max(int(max_tile_n), 1))
    if n <= tn:
        return n, budget                          # single full-extent tile
    tn = max(128, (tn // 128) * 128)
    for t in range(tn, 127, -128):
        if n % t == 0:
            return t, budget                      # exact tiling (no masking)
    return tn, budget                             # ragged last tile (masked)


def encoding_forward(x, codewords, scale, *, max_tile_n=None, mxu_dtype=None,
                     x_buffer_count=2):
    """Deep-TEN Encoding forward.

    x: (B, D, H, W) NCHW or (B, D, N) channels-first (consumed directly, no
    transpose materialized in HBM).  codewords: (K, D); scale: (K,).
    Returns E: (B, K, D) in x.dtype.

    max_tile_n: optional cap on the derived spatial tile (testing / tuning).
    mxu_dtype: optional dtype (e.g. jnp.bfloat16) for MXU operands when x is
      f32 (~2-3x MXU throughput, ~1e-2 rel. error).  None = native dtype.
    x_buffer_count: pipeline depth for the x input (3 can help on v7x; note
      the derived tile assumes 2 buffers, so lower max_tile_n accordingly).
    """
    if x.ndim == 4:
        B, D = x.shape[0], x.shape[1]
        x_bdn = x.reshape(B, D, x.shape[2] * x.shape[3])   # free reshape
    elif x.ndim == 3:
        B, D = x.shape[0], x.shape[1]
        x_bdn = x
    else:
        raise ValueError("Encoding Layer unknown input dims!")
    N = x_bdn.shape[-1]
    K = codewords.shape[0]
    assert codewords.shape[1] == D

    x_bytes = jnp.dtype(x_bdn.dtype).itemsize
    tn, vmem_budget = _derive_tile_and_vmem(N, D, K, x_bytes, max_tile_n)
    n_steps = pl.cdiv(N, tn)
    needs_mask = (tn * n_steps != N)

    mm_dtype = (jnp.dtype(mxu_dtype) if mxu_dtype is not None
                else jnp.dtype(x_bdn.dtype))

    # Grid-invariant precomputes (scale folded into the matmul-1 operands).
    scale_f32 = scale.astype(jnp.float32).reshape(K, 1)
    c_f32 = codewords.astype(jnp.float32)
    cs = (-2.0 * scale_f32 * c_f32).astype(mm_dtype)                 # (K, D)
    sc2 = scale_f32 * jnp.sum(c_f32 * c_f32, axis=-1, keepdims=True)  # (K, 1)

    kernel = functools.partial(_encoding_kernel, n_total=N,
                               needs_mask=needs_mask, mm_dtype=mm_dtype)

    x_spec_kwargs = {}
    if x_buffer_count != 2:
        x_spec_kwargs["pipeline_mode"] = pl.Buffered(x_buffer_count)
    x_spec = pl.BlockSpec((1, D, tn), lambda b, n: (b, 0, n), **x_spec_kwargs)

    flops = 4 * B * K * D * N + 8 * B * N * (D + K)
    transcendentals = B * N * (K + 1)
    bytes_accessed = (x_bdn.size * x_bytes + cs.size * cs.dtype.itemsize
                      + 2 * K * 4 + B * (D * K + K) * 4)

    et, aa = pl.pallas_call(
        kernel,
        out_shape=(jax.ShapeDtypeStruct((B, D, K), jnp.float32),
                   jax.ShapeDtypeStruct((B, K, 1), jnp.float32)),
        grid_spec=pltpu.PrefetchScalarGridSpec(
            num_scalar_prefetch=0,
            grid=(B, n_steps),                      # reduction axis (N) last
            in_specs=[
                x_spec,
                pl.BlockSpec((K, D), lambda b, n: (0, 0)),
                pl.BlockSpec((K, 1), lambda b, n: (0, 0)),
                pl.BlockSpec((K, 1), lambda b, n: (0, 0)),
            ],
            out_specs=[
                pl.BlockSpec((1, D, K), lambda b, n: (b, 0, 0)),
                pl.BlockSpec((1, K, 1), lambda b, n: (b, 0, 0)),
            ],
            scratch_shapes=[
                pltpu.VMEM((D, K), jnp.float32),    # acc_et (transposed)
                pltpu.VMEM((K, 1), jnp.float32),    # acc_a
            ],
        ),
        compiler_params=pltpu.CompilerParams(
            dimension_semantics=("parallel", "arbitrary"),
            vmem_limit_bytes=int(vmem_budget),
        ),
        cost_estimate=pl.CostEstimate(flops=flops,
                                      transcendentals=transcendentals,
                                      bytes_accessed=bytes_accessed),
    )(x_bdn, cs, scale_f32, sc2)

    # Tiny O(B*K*D) epilogue in plain XLA (once per call): un-transpose the
    # partial sums and subtract (sum_i a_ik) * d_k.  Negligible vs. reading x.
    E = jnp.swapaxes(et, 1, 2) - aa * c_f32[None]
    return E.astype(x.dtype)


def encoding_reference(x_nchw, codewords, scale):
    """Pure-JAX reference mirroring the PyTorch forward."""
    B, D = x_nchw.shape[0], x_nchw.shape[1]
    x = jnp.transpose(x_nchw.reshape(B, D, -1), (0, 2, 1))      # (B, N, D)
    r = x[:, :, None, :] - codewords[None, None, :, :]          # (B, N, K, D)
    sl = scale[None, None, :] * jnp.sum(r * r, axis=-1)         # (B, N, K)
    a = jax.nn.softmax(sl, axis=2)                              # (B, N, K)
    return jnp.sum(a[..., None] * r, axis=1)                    # (B, K, D)


if __name__ == "__main__":
    B, D, H, W, K = 2, 32, 8, 8, 16

    key = jax.random.PRNGKey(0)
    kx, kc, ks = jax.random.split(key, 3)

    X = jax.random.uniform(kx, (B, D, H, W), jnp.float32, -0.5, 0.5)

    # Deterministic init matching reset_params():
    std1 = 1.0 / (K * D) ** 0.5
    codewords = jax.random.uniform(kc, (K, D), jnp.float32, -std1, std1)
    scale = jax.random.uniform(ks, (K,), jnp.float32, -1.0, 0.0)

    # Single-tile path (N = 64 fits one block).
    E = jax.block_until_ready(encoding_forward(X, codewords, scale))
    E_ref = encoding_reference(X, codewords, scale)
    assert E.shape == (B, K, D)
    assert jnp.allclose(E, E_ref, atol=1e-4, rtol=1e-4), \
        float(jnp.max(jnp.abs(E - E_ref)))

    # Tiled + ragged (masked) path: N = 192, tn = 128 -> 2 steps, last masked.
    X2 = jax.random.uniform(kx, (B, D, 12, 16), jnp.float32, -0.5, 0.5)
    E2 = jax.block_until_ready(
        encoding_forward(X2, codewords, scale, max_tile_n=128))
    E2_ref = encoding_reference(X2, codewords, scale)
    assert jnp.allclose(E2, E2_ref, atol=1e-4, rtol=1e-4), \
        float(jnp.max(jnp.abs(E2 - E2_ref)))

    print("KERNEL_OK")
</pallas_src>

<mosaic_0001>
module attributes {stable_mosaic.version = 11 : i64} {
  func.func @_encoding_kernel(%arg0: i32, %arg1: i32, %arg2: memref<1x32x64xf32, #tpu.memory_space<vmem>>, %arg3: memref<16x32xf32, #tpu.memory_space<vmem>>, %arg4: memref<16x1xf32, #tpu.memory_space<vmem>>, %arg5: memref<16x1xf32, #tpu.memory_space<vmem>>, %arg6: memref<1x32x16xf32, #tpu.memory_space<vmem>>, %arg7: memref<1x16x1xf32, #tpu.memory_space<vmem>>, %arg8: memref<32x16xf32, #tpu.memory_space<vmem>>, %arg9: memref<16x1xf32, #tpu.memory_space<vmem>>) attributes {dimension_semantics = [#tpu.dimension_semantics<parallel>, #tpu.dimension_semantics<arbitrary>], iteration_bounds = array<i64: 2, 1>, scalar_prefetch = 0 : i64, scratch_operands = 2 : i64, tpu.core_type = #tpu.core_type<tc>, window_params = [{transform_indices = @transform_0, window_bounds = array<i64: 1, 32, 64>}, {pipeline_mode = #tpu.pipeline_mode<synchronous>, transform_indices = @transform_1, window_bounds = array<i64: 16, 32>}, {pipeline_mode = #tpu.pipeline_mode<synchronous>, transform_indices = @transform_2, window_bounds = array<i64: 16, 1>}, {pipeline_mode = #tpu.pipeline_mode<synchronous>, transform_indices = @transform_3, window_bounds = array<i64: 16, 1>}, {transform_indices = @transform_4, window_bounds = array<i64: 1, 32, 16>}, {transform_indices = @transform_5, window_bounds = array<i64: 1, 16, 1>}]} {
    %c0_i32 = arith.constant 0 : i32
    %0 = arith.cmpi eq, %arg1, %c0_i32 : i32
    %1 = arith.extui %0 : i1 to i32
    %c0_i32_0 = arith.constant 0 : i32
    %2 = arith.cmpi ne, %1, %c0_i32_0 : i32
    scf.if %2 {
      %cst_25 = arith.constant 0.000000e+00 : f32
      %44 = vector.broadcast %cst_25 : f32 to vector<32x16xf32>
      %c0_26 = arith.constant 0 : index
      %c0_27 = arith.constant 0 : index
      %45 = vector.load %arg8[%c0_26, %c0_27] : memref<32x16xf32, #tpu.memory_space<vmem>>, vector<32x16xf32>
      tpu.vector_store %arg8[%c0_26, %c0_27], %44 {strides = array<i32>} : memref<32x16xf32, #tpu.memory_space<vmem>>, vector<32x16xf32>,
      %cst_28 = arith.constant 0.000000e+00 : f32
      %46 = vector.broadcast %cst_28 : f32 to vector<16x1xf32>
      %c0_29 = arith.constant 0 : index
      %c0_30 = arith.constant 0 : index
      %47 = vector.load %arg9[%c0_29, %c0_30] : memref<16x1xf32, #tpu.memory_space<vmem>>, vector<16x1xf32>
      tpu.vector_store %arg9[%c0_29, %c0_30], %46 {strides = array<i32>} : memref<16x1xf32, #tpu.memory_space<vmem>>, vector<16x1xf32>,
    } else {
    }
    %c0 = arith.constant 0 : index
    %c0_1 = arith.constant 0 : index
    %c0_2 = arith.constant 0 : index
    %3 = vector.load %arg2[%c0, %c0_1, %c0_2] : memref<1x32x64xf32, #tpu.memory_space<vmem>>, vector<1x32x64xf32>
    %4 = vector.shape_cast %3 : vector<1x32x64xf32> to vector<32x64xf32>
    %c0_3 = arith.constant 0 : index
    %c0_4 = arith.constant 0 : index
    %5 = vector.load %arg4[%c0_3, %c0_4] : memref<16x1xf32, #tpu.memory_space<vmem>>, vector<16x1xf32>
    %c0_5 = arith.constant 0 : index
    %c0_6 = arith.constant 0 : index
    %6 = vector.load %arg5[%c0_5, %c0_6] : memref<16x1xf32, #tpu.memory_space<vmem>>, vector<16x1xf32>
    %7 = arith.mulf %4, %4 : vector<32x64xf32>
    %cst = arith.constant dense<0.000000e+00> : vector<64xf32>
    %8 = vector.multi_reduction <add>, %7, %cst [0] : vector<32x64xf32> to vector<64xf32>
    %9 = vector.shape_cast %8 : vector<64xf32> to vector<1x64xf32>
    %c0_7 = arith.constant 0 : index
    %c0_8 = arith.constant 0 : index
    %10 = vector.load %arg3[%c0_7, %c0_8] : memref<16x32xf32, #tpu.memory_space<vmem>>, vector<16x32xf32>
    %cst_9 = arith.constant dense<0.000000e+00> : vector<16x64xf32>
    %11 = tpu.matmul %10, %4, %cst_9 {dimension_numbers = #tpu.dot_dimension_numbers<[1], [0], [0], [1], [0, 0, 1, 1], [], []>} : vector<16x32xf32>, vector<32x64xf32>, vector<16x64xf32> -> vector<16x64xf32>
    %12 = vector.broadcast %5 : vector<16x1xf32> to vector<16x64xf32>
    %13 = vector.broadcast %9 : vector<1x64xf32> to vector<16x64xf32>
    %14 = arith.mulf %12, %13 : vector<16x64xf32>
    %15 = arith.addf %14, %11 : vector<16x64xf32>
    %16 = vector.broadcast %6 : vector<16x1xf32> to vector<16x64xf32>
    %17 = arith.addf %15, %16 : vector<16x64xf32>
    %cst_10 = arith.constant dense<0xFF800000> : vector<64xf32>
    %18 = vector.multi_reduction <maximumf>, %17, %cst_10 [0] : vector<16x64xf32> to vector<64xf32>
    %19 = vector.shape_cast %18 : vector<64xf32> to vector<1x64xf32>
    %20 = vector.broadcast %19 : vector<1x64xf32> to vector<16x64xf32>
    %21 = arith.subf %17, %20 : vector<16x64xf32>
    %22 = math.exp %21 : vector<16x64xf32>
    %cst_11 = arith.constant dense<0.000000e+00> : vector<64xf32>
    %23 = vector.multi_reduction <add>, %22, %cst_11 [0] : vector<16x64xf32> to vector<64xf32>
    %24 = vector.shape_cast %23 : vector<64xf32> to vector<1x64xf32>
    %25 = tpu.reciprocal %24 {approx = true} : vector<1x64xf32> -> vector<1x64xf32>
    %26 = arith.mulf %24, %25 : vector<1x64xf32>
    %cst_12 = arith.constant 2.000000e+00 : f32
    %27 = vector.broadcast %cst_12 : f32 to vector<1x64xf32>
    %28 = arith.subf %27, %26 : vector<1x64xf32>
    %29 = arith.mulf %25, %28 : vector<1x64xf32>
    %30 = vector.broadcast %29 : vector<1x64xf32> to vector<16x64xf32>
    %31 = arith.mulf %22, %30 : vector<16x64xf32>
    %c0_13 = arith.constant 0 : index
    %c0_14 = arith.constant 0 : index
    %32 = vector.load %arg8[%c0_13, %c0_14] : memref<32x16xf32, #tpu.memory_space<vmem>>, vector<32x16xf32>
    %cst_15 = arith.constant dense<0.000000e+00> : vector<32x16xf32>
    %33 = tpu.matmul %4, %31, %cst_15 {dimension_numbers = #tpu.dot_dimension_numbers<[1], [1], [0], [0], [0, 0, 1, 0], [], []>} : vector<32x64xf32>, vector<16x64xf32>, vector<32x16xf32> -> vector<32x16xf32>
    %34 = arith.addf %32, %33 : vector<32x16xf32>
    %c0_16 = arith.constant 0 : index
    %c0_17 = arith.constant 0 : index
    %35 = vector.load %arg8[%c0_16, %c0_17] : memref<32x16xf32, #tpu.memory_space<vmem>>, vector<32x16xf32>
    tpu.vector_store %arg8[%c0_16, %c0_17], %34 {strides = array<i32>} : memref<32x16xf32, #tpu.memory_space<vmem>>, vector<32x16xf32>,
    %c0_18 = arith.constant 0 : index
    %c0_19 = arith.constant 0 : index
    %36 = vector.load %arg9[%c0_18, %c0_19] : memref<16x1xf32, #tpu.memory_space<vmem>>, vector<16x1xf32>
    %cst_20 = arith.constant dense<0.000000e+00> : vector<16xf32>
    %37 = vector.multi_reduction <add>, %31, %cst_20 [1] : vector<16x64xf32> to vector<16xf32>
    %38 = vector.shape_cast %37 : vector<16xf32> to vector<16x1xf32>
    %39 = arith.addf %36, %38 : vector<16x1xf32>
    %c0_21 = arith.constant 0 : index
    %c0_22 = arith.constant 0 : index
    %40 = vector.load %arg9[%c0_21, %c0_22] : memref<16x1xf32, #tpu.memory_space<vmem>>, vector<16x1xf32>
    tpu.vector_store %arg9[%c0_21, %c0_22], %39 {strides = array<i32>} : memref<16x1xf32, #tpu.memory_space<vmem>>, vector<16x1xf32>,
    %c0_i32_23 = arith.constant 0 : i32
    %41 = arith.cmpi eq, %arg1, %c0_i32_23 : i32
    %42 = arith.extui %41 : i1 to i32
    %c0_i32_24 = arith.constant 0 : i32
    %43 = arith.cmpi ne, %42, %c0_i32_24 : i32
    scf.if %43 {
      %c0_25 = arith.constant 0 : index
      %c0_26 = arith.constant 0 : index
      %44 = vector.load %arg8[%c0_25, %c0_26] : memref<32x16xf32, #tpu.memory_space<vmem>>, vector<32x16xf32>
      %c0_27 = arith.constant 0 : index
      %c0_28 = arith.constant 0 : index
      %c0_29 = arith.constant 0 : index
      %45 = vector.load %arg6[%c0_27, %c0_28, %c0_29] : memref<1x32x16xf32, #tpu.memory_space<vmem>>, vector<1x32x16xf32>
      %46 = vector.shape_cast %45 : vector<1x32x16xf32> to vector<32x16xf32>
      %47 = vector.shape_cast %44 : vector<32x16xf32> to vector<1x32x16xf32>
      tpu.vector_store %arg6[%c0_27, %c0_28, %c0_29], %47 {strides = array<i32>} : memref<1x32x16xf32, #tpu.memory_space<vmem>>, vector<1x32x16xf32>,
      %c0_30 = arith.constant 0 : index
      %c0_31 = arith.constant 0 : index
      %48 = vector.load %arg9[%c0_30, %c0_31] : memref<16x1xf32, #tpu.memory_space<vmem>>, vector<16x1xf32>
      %c0_32 = arith.constant 0 : index
      %c0_33 = arith.constant 0 : index
      %c0_34 = arith.constant 0 : index
      %49 = vector.load %arg7[%c0_32, %c0_33, %c0_34] : memref<1x16x1xf32, #tpu.memory_space<vmem>>, vector<1x16x1xf32>
      %50 = vector.shape_cast %49 : vector<1x16x1xf32> to vector<16x1xf32>
      %51 = vector.shape_cast %48 : vector<16x1xf32> to vector<1x16x1xf32>
      tpu.vector_store %arg7[%c0_32, %c0_33, %c0_34], %51 {strides = array<i32>} : memref<1x16x1xf32, #tpu.memory_space<vmem>>, vector<1x16x1xf32>,
    } else {
    }
    return
  }
  func.func @transform_0(%arg0: i32, %arg1: i32) -> (i32, i32, i32) {
    %c0_i32 = arith.constant 0 : i32
    %c0_i32_0 = arith.constant 0 : i32
    return %arg0, %c0_i32, %arg1 : i32, i32, i32
  }
  func.func @transform_1(%arg0: i32, %arg1: i32) -> (i32, i32) {
    %c0_i32 = arith.constant 0 : i32
    %c0_i32_0 = arith.constant 0 : i32
    %c0_i32_1 = arith.constant 0 : i32
    return %c0_i32, %c0_i32_0 : i32, i32
  }
  func.func @transform_2(%arg0: i32, %arg1: i32) -> (i32, i32) {
    %c0_i32 = arith.constant 0 : i32
    %c0_i32_0 = arith.constant 0 : i32
    %c0_i32_1 = arith.constant 0 : i32
    return %c0_i32, %c0_i32_0 : i32, i32
  }
  func.func @transform_3(%arg0: i32, %arg1: i32) -> (i32, i32) {
    %c0_i32 = arith.constant 0 : i32
    %c0_i32_0 = arith.constant 0 : i32
    %c0_i32_1 = arith.constant 0 : i32
    return %c0_i32, %c0_i32_0 : i32, i32
  }
  func.func @transform_4(%arg0: i32, %arg1: i32) -> (i32, i32, i32) {
    %c0_i32 = arith.constant 0 : i32
    %c0_i32_0 = arith.constant 0 : i32
    %c0_i32_1 = arith.constant 0 : i32
    return %arg0, %c0_i32, %c0_i32_0 : i32, i32, i32
  }
  func.func @transform_5(%arg0: i32, %arg1: i32) -> (i32, i32, i32) {
    %c0_i32 = arith.constant 0 : i32
    %c0_i32_0 = arith.constant 0 : i32
    %c0_i32_1 = arith.constant 0 : i32
    return %arg0, %c0_i32, %c0_i32_0 : i32, i32, i32
  }
}

</mosaic_0001>

<bundles_post_ra>
// kernel: tpu_custom_call.1
= control target key start
LH: loop header
LB: loop body
LE: loop exit
PB: predicated region body
PF: predicated region fallthrough
CT: control target
= control target key end

     0   :  { %11 = vsyncpa [#allocation5], 0  ;;  %s1132_s0 = inlined_call_operand.hbm [shape: f32[2,32,64], index: 0, kind: input, shape index: {}]   ;;  %s1133_s1 = inlined_call_operand.vmem [shape: f32[16,32], index: 1, kind: input, shape index: {}]   ;;  %s1134_s2 = inlined_call_operand.vmem [shape: f32[16,1], index: 2, kind: input, shape index: {}]   ;;  %s1135_s3 = inlined_call_operand.vmem [shape: f32[16,1], index: 3, kind: input, shape index: {}]   ;;  %s1136_s4 = inlined_call_operand.vmem [shape: f32[2,32,16], index: 4, kind: output, shape index: {0}]   ;;  %s1137_s5 = inlined_call_operand.vmem [shape: f32[2,16,1], index: 5, kind: output, shape index: {1}]  }
   0x1   :  { %13 = vsyncpa [#allocation5 + $0x1], 0  ;;  %s946_s18 = smov 0   ;;  %s948_s19 = smov 0  }
   0x2   :  { %s950_s20 = smov 0   ;;  %s952_s21 = smov 0  }
   0x3   :  { %s954_s22 = smov 0   ;;  %s956_s23 = smov 0  }
   0x4 LB: > { %s705_s24 = sadd.s32 4294967295, %s909_s23   ;;  %s31_s25 = sadd.s32 1, %s905_s22  ;;  %s909_s23 = sphi %s956_s23, %s19_s23   ;;  %s905_s22 = sphi %s954_s22, %s1145_s22   ;;  %s901_s21 = sphi %s952_s21, %s1144_s21   ;;  %s897_s20 = sphi %s950_s20, %s1143_s20   ;;  %s893_s19 = sphi %s948_s19, %s1142_s19   ;;  %s889_s18 = sphi %s946_s18, %s1141_s18  }
   0x5   : > { %p33_p0 = scmp.ge.s32.totalorder %s31_s25, 2  ;;  %s40_s26 = sadd.s32 1, %s897_s20 }
   0x6   : > { %p47_p1 = scmp.ne.s32.totalorder %s897_s20, %s893_s19  ;;  %p48_p2 = scmp.eq.s32.totalorder %s909_s23, 0 }
   0x7   : > { %s1147_s25 = smov (%p33_p0, %s31_s25), 0  ;;  %p53_p4 = scmp.ne.s32.totalorder %s893_s19, %s889_s18 }
   0x8   : > { %p982_p3 = por %p48_p2, %p47_p1  ;;  %s35_s28 = ssub.s32 %s905_s22, %s1147_s25 }
   0x9   : > { %p54_p5 = scmp.eq.s32.totalorder %s705_s24, 0  ;;  %p38_p6 = scmp.eq.s32.totalorder %s35_s28, 0 }
   0xa   : > { %p770_p8 = scmp.lt.s32.totalorder %s909_s23, 2  ;;  %s201_s6 = sand.u32 1, %s897_s20  }
   0xb   : > { %p989_p7 = por %p54_p5, %p53_p4  ;;  %s728_s7 = sshll.u32 %s905_s22, 9 }
   0xc   : > { %s995_s30 = scalar_select %p38_p6, %s897_s20, %s40_s26  }
   0xd   : > { %s709_s8 = sshll.u32 %s201_s6, 5  ;;  %s212_s11 = scalar_lea.hbm %s1132_s0, %s728_s7 }
   0xe   : > { %s205_s12 = scalar_lea.vmem [#allocation4], %s709_s8  ;;  %p1004_p9 = pnand %p770_p8, %p982_p3 }
   0xf   : > { %s213_s13 = sshll.u32 %s205_s12, 4  ;;  %s202_s15 = scalar_lea.sflag [#allocation5], %s201_s6  ;;  %s214_s13 = int_to_ptr.vmem [resolvable:$true] %s213_s13 }
  0x10   : > { %p833_p10 = pneg %p1004_p9  ;;  %s844_s16 = scalar_lea.vmem %s214_s13, 512 }
  0x11   : > { %p845_p11 = scmp.ne.s32.totalorder %s214_s13, %s844_s16  ;;  %s911_s17 = smov [#allocation4]  }
  0x12   : > { %s849_s18 = sshll.u32 %s911_s17, 4  ;;  %s850_s18 = int_to_ptr.vmem [resolvable:$false] %s849_s18 }
  0x13   : > { %p847_p12 = pnand %p845_p11, %p833_p10  ;;  %s851_s24 = scalar_lea.vmem %s850_s18, 1024 }
  0x14   : > { %p852_p0 = scmp.lt.s32.totalorder %s214_s13, %s850_s18  ;;  %p853_p1 = scmp.lt.s32.totalorder %s851_s24, %s844_s16 }
  0x15   : > { %p848_p13 = pneg %p847_p12 }
  0x16   : > { %p854_p2 = por %p853_p1, %p852_p0 }
  0x18   : > { %p855_p3 = pnand %p854_p2, %p848_p13 }
  0x1a   : > { %858 = shalt.err (!%p855_p3)
}
  0x1b   : > { %s912_s26 = smov 128   ;;  %s913_s27 = smov 8  }
  0x1c   : > { %769 = dma.hbm_to_vmem [thread:$0]  (!%p1004_p9), %s212_s11, 512, %s214_s13, %s202_s15, %s912_s26, %s912_s26, %s913_s27  }
  0x1d   : > { %p712_p4 = scmp.ge.s32.totalorder %s909_s23, 1  ;;  %p221_p5 = scmp.lt.s32.totalorder %s909_s23, 3 }
  0x1f   : > { %p222_p6 = pnand %p712_p4, %p221_p5 }
  0x20   : > { %s227_s28 = sand.u32 (!%p222_p6), 1, %s893_s19  }
  0x21   : > { %225 = sbr.rel (%p222_p6) target bundleno = 537 (0x219), region = 36  ;;  %s713_s6 = sshll.u32 (!%p222_p6), %s227_s28, 5 }
  0x22   : > { %s228_s7 = scalar_lea.sflag (!%p222_p6), [#allocation5], %s227_s28  ;;  %s231_s8 = scalar_lea.vmem (!%p222_p6), [#allocation4], %s713_s6 }
  0x26   : > { %884 = dma.done.wait (%p989_p7), %s228_s7, 512  }
  0x27   : > { %886 = vsyncadd (%p989_p7), %s228_s7, 4294966784  ;;  %v914_v0 = vmov 0   ;;  %vm313_vm0 = vcmask 261120   ;;  %v1019_v1 = vld [vmem:[%s231_s8 + $0x18] sm:$0xff]  ;;  %v1021_v2 = vld [vmem:[%s231_s8 + $0x10] sm:$0xff]  ;;  %vm297_vm1 = vcmask 523264  }
  0x28   : > { %823 = vset.pattern.permute.xlu0 %v914_v0  ;;  %824 = vset.pattern.permute.xlu1 %v914_v0  ;;  %v311_v3 = vld [vmem:[%s1133_s1] sm:$0xff]  ;;  %v1028_v4 = vld [vmem:[%s231_s8 + $0x8] sm:$0xff]  ;;  %v285_v7 = vld [vmem:[%s231_s8] sm:$0xff]  ;;  %v295_v13 = vmul.f32 %v1021_v2, %v1021_v2  ;;  %vm282_vm2 = vcmask 7168   ;;  %v915_v17 = vmov 0.0   ;;  %v296_v18 = vmul.f32 %v1019_v1, %v1019_v1  ;;  %p263_p7 = scmp.lt.s32.totalorder %s901_s21, 1 }
  0x29   : > { %743 = vmatprep.subr.mxu0 %v1019_v1  ;;  %751 = vmatprep.mubr.msk.f32.mxu0 %vm313_vm0, %v311_v3  ;;  %v289_v5 = vld [vmem:[%s1134_s2] sm:$0xff]  ;;  %v290_v8 = vld [vmem:[%s1134_s2 + $0x8] sm:$0xff]  ;;  %v294_v11 = vmul.f32 %v1028_v4, %v1028_v4  ;;  %v293_v12 = vmul.f32 %v285_v7, %v285_v7  ;;  %284 = vst.msk [vmem:[#allocation3 + $0x8] sm:$0xff] %vm282_vm2, %v915_v17  ;;  %283 = vst.msk [vmem:[#allocation3] sm:$0xff] %vm282_vm2, %v915_v17  ;;  %vm277_vm3 = vcmask 130048  }
  0x2a   : > { %744 = vmatpush3.msra.mxu0 %v1019_v1  ;;  %v291_v6 = vld [vmem:[%s1135_s3] sm:$0xff]  ;;  %397 = vperm.xlu0 %823, %v289_v5   ;;  %v292_v9 = vld [vmem:[%s1135_s3 + $0x8] sm:$0xff]  ;;  %v301_v19 = vsel %vm297_vm1, %v295_v13, 0.0  ;;  %v303_v21 = vsel %vm297_vm1, %v296_v18, 0.0  ;;  %279 = vst.msk [vmem:[#allocation2 + $0x8] sm:$0xff] %vm277_vm3, %v915_v17  ;;  %278 = vst.msk [vmem:[#allocation2] sm:$0xff] %vm277_vm3, %v915_v17 }
  0x2b   : > { %745 = vmatprep.subr.mxu0 %v1021_v2  ;;  %411 = vperm.xlu1 %824, %v291_v6   ;;  %v312_v10 = vld [vmem:[%s1133_s1 + $0x8] sm:$0xff]  ;;  %v299_v14 = vsel %vm297_vm1, %v294_v11, 0.0  ;;  %v298_v15 = vsel %vm297_vm1, %v293_v12, 0.0  ;;  %280 = vst.msk [vmem:[#allocation2 + $0x10] sm:$0xff] %vm277_vm3, %v915_v17  ;;  %281 = vst.msk [vmem:[#allocation2 + $0x18] sm:$0xff] %vm277_vm3, %v915_v17  ;;  %s1149_s21 = smov (!%p263_p7, %s901_s21), 1 }
  0x2c   : > { %746 = vmatpush3.msra.mxu0 %v1021_v2  ;;  %758 = vmatprep.mubr.msk.f32.mxu1 %vm297_vm1, %v285_v7  ;;  %v300_v16 = vadd.f32 %v299_v14, %v298_v15  ;;  %s730_s26 = sshll.u32 %s1149_s21, 4  ;;  %s729_s7 = sshll.u32 %s1149_s21, 5 }
  0x2d   : > { %747 = vmatprep.subr.mxu0 %v1028_v4  ;;  %s272_s6 = scalar_lea.vmem %s1137_s5, %s730_s26  ;;  %s267_s10 = scalar_lea.vmem %s1136_s4, %s729_s7 }
  0x2e   : > { %748 = vmatpush3.msra.mxu0 %v1028_v4  ;;  %402 = vperm.xlu0 %823, %v290_v8   ;;  %v302_v20 = vadd.f32 %v301_v19, %v300_v16 }
  0x2f   : > { %749 = vmatprep.subr.mxu0 %v285_v7  ;;  %416 = vperm.xlu1 %824, %v292_v9  }
  0x30   : > { %750 = vmatpush3.msra.mxu0 %v285_v7  ;;  %v304_v22 = vadd.f32 %v303_v21, %v302_v20  ;;  %v567_v12 = vld [vmem:[#allocation3] sm:$0xff] }
  0x31   : > { %752 = vmatmul.mubr.msk.f32.vlgmr.msra.gmra.mxu0 %vm313_vm0, %v312_v10  ;;  %v452_v17 = vld [vmem:[#allocation2 + $0x8] sm:$0xff]  ;;  %v451_v19 = vld [vmem:[#allocation2] sm:$0xff] }
  0x32   : > { %v305_v23 = vrot.slane %v304_v22, 4 }
  0x34   : > { %v306_v24 = vadd.f32 %v305_v23, %v304_v22  ;;  %v454_v22 = vld [vmem:[#allocation2 + $0x18] sm:$0xff] }
  0x36   : > { %v307_v25 = vrot.slane %v306_v24, 2 }
  0x38   : > { %v308_v26 = vadd.f32 %v307_v25, %v306_v24  ;;  %v453_v25 = vld [vmem:[#allocation2 + $0x10] sm:$0xff] }
  0x3a   : > { %v309_v28 = vrot.slane %v308_v26, 1 }
  0x3c   : > { %v310_v29 = vadd.f32 %v309_v28, %v308_v26 }
  0xa5   : > { %v398_v27 = vpop.permute.xlu0 %397 }
  0xa6   : > { %v412_v30 = vpop.permute.xlu1 %411  ;;  %v405_v34 = vmul.f32 %v398_v27, %v310_v29 }
  0xa9   : > { %v403_v31 = vpop.permute.xlu0 %402 }
  0xaa   : > { %v406_v32 = vmul.f32 %v403_v31, %v310_v29  ;;  %v417_v36 = vpop.permute.xlu1 %416 }
  0xf1   : > { %v753_v33 = vpop.f32.mrf.mxu0 }
  0xf2   : > { %v408_v35 = vadd.f32 %v753_v33, %v406_v32 }
  0xf3   : > { %v386_v37 = vpop.f32.mrf.mxu0 }
  0xf4   : > { %v420_v38 = vadd.f32 %v417_v36, %v408_v35  ;;  %v407_v39 = vadd.f32 %v405_v34, %v386_v37 }
  0xf6   : > { %v419_v40 = vadd.f32 %v412_v30, %v407_v39  ;;  %v422_v41 = vsel %vm297_vm1, %v420_v38, -inf }
  0xf8   : > { %v421_v42 = vsel %vm297_vm1, %v419_v40, -inf }
  0xf9   : > { %v423_v43 = vmax.f32 %v421_v42, %v422_v41 }
  0xfb   : > { %v424_v44 = vrot.slane %v423_v43, 4 }
  0xfd   : > { %v425_v45 = vmax.f32 %v423_v43, %v424_v44 }
  0xff   : > { %v426_v46 = vrot.slane %v425_v45, 2 }
 0x101   : > { %v427_v47 = vmax.f32 %v425_v45, %v426_v46 }
 0x103   : > { %v428_v48 = vrot.slane %v427_v47, 1 }
 0x105   : > { %v429_v49 = vmax.f32 %v427_v47, %v428_v48 }
 0x107   : > { %v430_v50 = vsub.f32 %v419_v40, %v429_v49  ;;  %v431_v51 = vsub.f32 %v420_v38, %v429_v49 }
 0x109   : > { %v432_v52 = vmul.f32 1.442695, %v430_v50  ;;  %v434_v53 = vmul.f32 1.442695, %v431_v51 }
 0x10b   : > { %825 = vpow2.f32 %v432_v52 }
 0x10c   : > { %827 = vpow2.f32 %v434_v53 }
 0x118   : > { %v826_v54 = vpop.eup %825 }
 0x119   : > { %v828_v55 = vpop.eup %827  ;;  %v436_v56 = vsel %vm297_vm1, %v826_v54, 0.0 }
 0x11a   : > { %v437_v57 = vsel %vm297_vm1, %v828_v55, 0.0 }
 0x11b   : > { %v438_v58 = vadd.f32 %v437_v57, %v436_v56 }
 0x11d   : > { %v439_v59 = vrot.slane %v438_v58, 4 }
 0x11f   : > { %v440_v60 = vadd.f32 %v439_v59, %v438_v58 }
 0x121   : > { %v441_v61 = vrot.slane %v440_v60, 2 }
 0x123   : > { %v442_v62 = vadd.f32 %v441_v61, %v440_v60 }
 0x125   : > { %v443_v63 = vrot.slane %v442_v62, 1 }
 0x127   : > { %v444_v0 = vadd.f32 %v443_v63, %v442_v62 }
 0x129   : > { %829 = vrcp.f32 %v444_v0 }
 0x136   : > { %v830_v3 = vpop.eup %829 }
 0x137   : > { %v446_v5 = vmul.f32 %v830_v3, %v444_v0 }
 0x139   : > { %v447_v6 = vsub.f32 2.0, %v446_v5 }
 0x13b   : > { %v448_v7 = vmul.f32 %v830_v3, %v447_v6 }
 0x13d   : > { %v450_v8 = vmul.f32 %v828_v55, %v448_v7  ;;  %v449_v9 = vmul.f32 %v826_v54, %v448_v7 }
 0x13f   : > { %754 = vmatprep.subr.msk.mxu1 %vm297_vm1, %v450_v8  ;;  %v572_v10 = vsel %vm297_vm1, %v450_v8, 0.0  ;;  %v569_v11 = vsel %vm297_vm1, %v449_v9, 0.0 }
 0x140   : > { %573 = vadd.xlane.f32.xlu1 %v572_v10  ;;  %755 = vmatpush3.xpose.msk.msra.mxu1 %vm297_vm1, %v450_v8 }
 0x141   : > { %570 = vadd.xlane.f32.xlu0 %v569_v11  ;;  %756 = vmatprep.subr.msk.mxu1 %vm297_vm1, %v449_v9 }
 0x144   : > { %757 = vmatpush3.xpose.msk.msra.mxu1 %vm297_vm1, %v449_v9 }
 0x147   : > { %759 = vmatmul.mubr.msk.f32.vlgmr.msra.gmra.mxu1 %vm297_vm1, %v1028_v4  ;;  %v568_v4 = vld [vmem:[#allocation3 + $0x8] sm:$0xff] }
 0x148   : > { %761 = vmatprep.mubr.msk.f32.mxu1 %vm297_vm1, %v1021_v2 }
 0x14b   : > { %762 = vmatmul.mubr.msk.f32.gmra.mxu1 %vm297_vm1, %v1019_v1 }
 0x1c9   : > { %v574_v2 = vpop.xlane.xlu1 %573 }
 0x1ca   : > { %v576_v1 = vadd.f32 %v574_v2, %v568_v4  ;;  %v571_v13 = vpop.xlane.xlu0 %570 }
 0x1cb   : > { %v575_v14 = vadd.f32 %v571_v13, %v567_v12 }
 0x1cc   : > { %579 = vst.msk [vmem:[#allocation3 + $0x8] sm:$0xff] %vm282_vm2, %v576_v1 }
 0x1cd   : > { %578 = vst.msk [vmem:[#allocation3] sm:$0xff] %vm282_vm2, %v575_v14 }
 0x1d3   : > { %v592_v15 = vld [vmem:[#allocation3 + $0x8] sm:$0xff] }
 0x1d4   : > { %594 = vst.msk [vmem:[%s272_s6 + $0x8] sm:$0xff] %vm282_vm2, %v592_v15  ;;  %v591_v16 = vld [vmem:[#allocation3] sm:$0xff] }
 0x1d5   : > { %593 = vst.msk [vmem:[%s272_s6] sm:$0xff] %vm282_vm2, %v591_v16 }
 0x207   : > { %v760_v18 = vpop.f32.mrf.mxu1 }
 0x208   : > { %v559_v20 = vadd.f32 %v760_v18, %v452_v17 }
 0x209   : > { %v539_v21 = vpop.f32.mrf.mxu1 }
 0x20a   : > { %564 = vst.msk [vmem:[#allocation2 + $0x8] sm:$0xff] %vm277_vm3, %v559_v20  ;;  %v558_v23 = vadd.f32 %v539_v21, %v451_v19 }
 0x20b   : > { %v763_v24 = vpop.f32.mrf.mxu1 }
 0x20c   : > { %563 = vst.msk [vmem:[#allocation2] sm:$0xff] %vm277_vm3, %v558_v23  ;;  %v561_v26 = vadd.f32 %v763_v24, %v454_v22 }
 0x20d   : > { %v549_v27 = vpop.f32.mrf.mxu1 }
 0x20e   : > { %566 = vst.msk [vmem:[#allocation2 + $0x18] sm:$0xff] %vm277_vm3, %v561_v26  ;;  %v560_v28 = vadd.f32 %v549_v27, %v453_v25 }
 0x210   : > { %565 = vst.msk [vmem:[#allocation2 + $0x10] sm:$0xff] %vm277_vm3, %v560_v28 }
 0x211   : > { %v584_v29 = vld [vmem:[#allocation2 + $0x8] sm:$0xff] }
 0x212   : > { %588 = vst.msk [vmem:[%s267_s10 + $0x8] sm:$0xff] %vm277_vm3, %v584_v29 }
 0x213   : > { %v583_v30 = vld [vmem:[#allocation2] sm:$0xff] }
 0x214   : > { %587 = vst.msk [vmem:[%s267_s10] sm:$0xff] %vm277_vm3, %v583_v30 }
 0x215   : > { %v586_v31 = vld [vmem:[#allocation2 + $0x18] sm:$0xff] }
 0x216   : > { %590 = vst.msk [vmem:[%s267_s10 + $0x18] sm:$0xff] %vm277_vm3, %v586_v31 }
 0x217   : > { %v585_v32 = vld [vmem:[#allocation2 + $0x10] sm:$0xff] }
 0x218   : > { %589 = vst.msk [vmem:[%s267_s10 + $0x10] sm:$0xff] %vm277_vm3, %v585_v32 }
 0x219 PF: > { %s19_s23 = sadd.s32 1, %s909_s23   ;;  %s1141_s18 = smov %s893_s19 }
 0x21a   : > { %p16_p8 = scmp.ge.s32.totalorder %s19_s23, 4   ;;  %s1142_s19 = smov %s897_s20 }
 0x21b   : > { %s1143_s20 = smov %s995_s30  ;;  %s1144_s21 = smov %s905_s22 }
 0x21c   : > { %s1145_s22 = smov %s1147_s25  ;;  %18 = sbr.rel (!%p16_p8) target bundleno = 4 (0x4), region = 96 }
 0x221   :  { %632 = vsyncpa [#allocation5], 1 }
 0x222   :  { %634 = vsyncpa [#allocation5 + $0x1], 1 }

</bundles_post_ra>
